<compile_context>
chip_gen: v7x
topology: tpu7x:2x2x1
jax: 0.10.0
libtpu: 0.0.40
codegen_flags: <defaults>
</compile_context>

<pallas_src>
import jax
import jax.numpy as jnp
from jax.experimental import pallas as pl
from jax.experimental.pallas import tpu as pltpu


def _round_up(x, m):
    return ((x + m - 1) // m) * m


def _largest_divisor_leq(n, cap):
    cap = max(1, min(int(cap), int(n)))
    for d in range(cap, 0, -1):
        if n % d == 0:
            return d
    return 1


def _make_outconv_kernel(nb, cin, use_vpu):
    def kernel(x_ref, w_ref, b_ref, o_ref):
        # x_ref: (Nb, Cin, T)   pixel tile, pixels on the 128-lane axis
        # w_ref: (Cout, Cin)    resident weight
        # b_ref: (Cout, 1)      resident bias
        # o_ref: (Nb, Cout, T)  output tile (lane-dense)
        w = w_ref[...]
        b = b_ref[...].astype(jnp.float32)                 # (Cout, 1)
        if use_vpu:
            # Tiny Cout: a K=Cin, M=Cout matmul would use <2% of the MXU.
            # Do the contraction as Cin VPU broadcast-FMAs over lane-dense
            # (Nb, Cout, T) values instead — vectorized over batch, no loop.
            xf = x_ref[...].astype(jnp.float32)             # (Nb, Cin, T)
            wf = w.astype(jnp.float32)                      # (Cout, Cin)
            acc = wf[None, :, 0:1] * xf[:, 0:1, :]
            for ci in range(1, cin):
                acc = acc + wf[None, :, ci:ci + 1] * xf[:, ci:ci + 1, :]
            # Bias added in f32 before the final cast (single rounding).
            o_ref[...] = (acc + b[None]).astype(o_ref.dtype)
        else:
            # Larger channel counts: per-image MXU matmul (Cout,Cin)@(Cin,T);
            # result is already (Cout, T) -> lane-dense, no transpose needed.
            for n in range(nb):
                acc = jnp.dot(w, x_ref[n], preferred_element_type=jnp.float32)
                o_ref[n] = (acc + b).astype(o_ref.dtype)
    return kernel


def _choose_tiling(N, Cin, Cout, HW, itemsize, use_vpu):
    """Pick (Nb, tile_p, vmem_cap) purely from the VMEM budget."""
    hw_aligned = _round_up(HW, 128)
    per_col = (Cin + Cout) * itemsize        # in+out bytes per pixel column, one image

    try:
        vmem_cap = int(pltpu.get_tpu_info().vmem_capacity_bytes)
    except Exception:
        vmem_cap = 64 * 1024 * 1024          # conservative (v7x-sized) fallback

    # ~3/8 of physical VMEM for the double-buffered in+out tiles; the rest is
    # left for f32 intermediates, resident weight/bias and compiler slack.
    tile_budget = (vmem_cap * 3) // 8
    max_cols = max(128, (tile_budget // (2 * per_col) // 128) * 128)

    if max_cols >= hw_aligned:
        # Full image per grid step -> one contiguous DMA per input block.
        tile_p = hw_aligned
        max_nb = max(1, max_cols // hw_aligned)
        if not use_vpu:
            max_nb = min(max_nb, 16)         # bound unrolled per-image MXU matmuls
        nb = _largest_divisor_leq(N, max_nb)
    else:
        tile_p = min(max_cols, hw_aligned)   # multiple of 128, < HW -> >=2 pixel blocks
        nb = 1

    # Guarantee >= 2 grid steps along a parallel axis when the problem allows
    # it so both v7x TensorCores contribute HBM bandwidth; the extra ~0.35 us
    # step is noise on single-TC chips.
    grid_n = pl.cdiv(N, nb)
    grid_p = pl.cdiv(HW, tile_p)
    if grid_n * grid_p < 2:
        if N >= 2:
            nb = _largest_divisor_leq(N, N // 2)
        elif pl.cdiv(HW, 128) >= 2:
            tile_p = 128 * pl.cdiv(pl.cdiv(HW, 128), 2)
        # else: single image with HW <= 128 — nothing to split.

    return nb, tile_p, vmem_cap


def outconv_pallas(x_nchw, weight, bias):
    """1x1 conv. x_nchw: (N, Cin, H, W); weight: (Cout, Cin, 1, 1); bias: (Cout,)."""
    N, Cin, H, W = x_nchw.shape
    Cout = weight.shape[0]
    HW = H * W
    itemsize = jnp.dtype(x_nchw.dtype).itemsize

    # NCHW is channel-major: flatten spatial dims with NO transpose / NO pad.
    x3d = x_nchw.reshape(N, Cin, HW)
    w2d = weight.reshape(Cout, Cin)
    b2d = bias.reshape(Cout, 1)

    use_vpu = (Cout <= 8 and Cin <= 128)
    nb, tile_p, vmem_cap = _choose_tiling(N, Cin, Cout, HW, itemsize, use_vpu)

    grid = (pl.cdiv(N, nb), pl.cdiv(HW, tile_p))

    # VMEM limit consistent with the chosen tiles: double-buffered in+out
    # tiles + worst-case f32 intermediates + resident weight/bias + slack,
    # capped at 90% of this generation's physical VMEM.
    in_tile = nb * tile_p * Cin * itemsize
    out_tile = nb * tile_p * Cout * itemsize
    resident = (Cout * Cin + Cout) * itemsize
    vmem_needed = (2 * (in_tile + out_tile)
                   + 4 * nb * tile_p * (Cin + Cout)
                   + 4 * resident + (2 << 20))
    vmem_limit = int(min(max(vmem_needed, 32 << 20), (vmem_cap * 9) // 10))

    kernel = _make_outconv_kernel(nb, Cin, use_vpu)

    out3d = pl.pallas_call(
        kernel,
        out_shape=jax.ShapeDtypeStruct((N, Cout, HW), x_nchw.dtype),
        grid_spec=pltpu.PrefetchScalarGridSpec(
            num_scalar_prefetch=0,
            grid=grid,
            in_specs=[
                pl.BlockSpec((nb, Cin, tile_p), lambda n, p: (n, 0, p)),
                pl.BlockSpec((Cout, Cin), lambda n, p: (0, 0)),   # resident weight
                pl.BlockSpec((Cout, 1), lambda n, p: (0, 0)),     # resident bias
            ],
            out_specs=pl.BlockSpec((nb, Cout, tile_p), lambda n, p: (n, 0, p)),
        ),
        compiler_params=pltpu.CompilerParams(
            # No reduction axes: both grid axes embarrassingly parallel.
            dimension_semantics=("parallel", "parallel"),
            vmem_limit_bytes=vmem_limit,
        ),
    )(x3d, w2d, b2d)

    # (N, Cout, H*W) -> NCHW, a pure reshape (no transpose pass).
    return out3d.reshape(N, Cout, H, W)


if __name__ == "__main__":
    key = jax.random.PRNGKey(0)
    k_x, k_w, k_b = jax.random.split(key, 3)

    N, Cin, Cout, H, W = 2, 4, 3, 16, 16

    x = jax.random.normal(k_x, (N, Cin, H, W), dtype=jnp.float32)
    # Deterministic "PyTorch-like" init (uniform in +-1/sqrt(fan_in))
    bound = 1.0 / (Cin ** 0.5)
    weight = jax.random.uniform(k_w, (Cout, Cin, 1, 1), jnp.float32, -bound, bound)
    bias = jax.random.uniform(k_b, (Cout,), jnp.float32, -bound, bound)

    out = outconv_pallas(x, weight, bias)
    out = jax.block_until_ready(out)

    # Reference check (plain JAX einsum over channel dim)
    ref = jnp.einsum("nchw,oc->nohw", x, weight.reshape(Cout, Cin)) + bias[None, :, None, None]
    assert out.shape == (N, Cout, H, W)
    assert jnp.allclose(out, ref, atol=1e-5, rtol=1e-5)

    print("KERNEL_OK")
</pallas_src>

<mosaic_0001>
module attributes {stable_mosaic.version = 11 : i64} {
  func.func @kernel(%arg0: i32, %arg1: i32, %arg2: memref<1x4x256xf32, #tpu.memory_space<vmem>>, %arg3: memref<3x4xf32, #tpu.memory_space<vmem>>, %arg4: memref<3x1xf32, #tpu.memory_space<vmem>>, %arg5: memref<1x3x256xf32, #tpu.memory_space<vmem>>) attributes {dimension_semantics = [#tpu.dimension_semantics<parallel>, #tpu.dimension_semantics<parallel>], iteration_bounds = array<i64: 2, 1>, scalar_prefetch = 0 : i64, scratch_operands = 0 : i64, tpu.core_type = #tpu.core_type<tc>, window_params = [{transform_indices = @transform_0, window_bounds = array<i64: 1, 4, 256>}, {pipeline_mode = #tpu.pipeline_mode<synchronous>, transform_indices = @transform_1, window_bounds = array<i64: 3, 4>}, {pipeline_mode = #tpu.pipeline_mode<synchronous>, transform_indices = @transform_2, window_bounds = array<i64: 3, 1>}, {transform_indices = @transform_3, window_bounds = array<i64: 1, 3, 256>}]} {
    %c0 = arith.constant 0 : index
    %c0_0 = arith.constant 0 : index
    %0 = vector.load %arg3[%c0, %c0_0] : memref<3x4xf32, #tpu.memory_space<vmem>>, vector<3x4xf32>
    %c0_1 = arith.constant 0 : index
    %c0_2 = arith.constant 0 : index
    %1 = vector.load %arg4[%c0_1, %c0_2] : memref<3x1xf32, #tpu.memory_space<vmem>>, vector<3x1xf32>
    %c0_3 = arith.constant 0 : index
    %c0_4 = arith.constant 0 : index
    %c0_5 = arith.constant 0 : index
    %2 = vector.load %arg2[%c0_3, %c0_4, %c0_5] : memref<1x4x256xf32, #tpu.memory_space<vmem>>, vector<1x4x256xf32>
    %3 = vector.extract_strided_slice %0 {offsets = [0, 0], sizes = [3, 1], strides = [1, 1]} : vector<3x4xf32> to vector<3x1xf32>
    %4 = vector.shape_cast %3 : vector<3x1xf32> to vector<1x3x1xf32>
    %5 = vector.extract_strided_slice %2 {offsets = [0, 0, 0], sizes = [1, 1, 256], strides = [1, 1, 1]} : vector<1x4x256xf32> to vector<1x1x256xf32>
    %6 = vector.broadcast %4 : vector<1x3x1xf32> to vector<1x3x256xf32>
    %7 = vector.broadcast %5 : vector<1x1x256xf32> to vector<1x3x256xf32>
    %8 = arith.mulf %6, %7 : vector<1x3x256xf32>
    %9 = vector.extract_strided_slice %0 {offsets = [0, 1], sizes = [3, 1], strides = [1, 1]} : vector<3x4xf32> to vector<3x1xf32>
    %10 = vector.shape_cast %9 : vector<3x1xf32> to vector<1x3x1xf32>
    %11 = vector.extract_strided_slice %2 {offsets = [0, 1, 0], sizes = [1, 1, 256], strides = [1, 1, 1]} : vector<1x4x256xf32> to vector<1x1x256xf32>
    %12 = vector.broadcast %10 : vector<1x3x1xf32> to vector<1x3x256xf32>
    %13 = vector.broadcast %11 : vector<1x1x256xf32> to vector<1x3x256xf32>
    %14 = arith.mulf %12, %13 : vector<1x3x256xf32>
    %15 = arith.addf %8, %14 : vector<1x3x256xf32>
    %16 = vector.extract_strided_slice %0 {offsets = [0, 2], sizes = [3, 1], strides = [1, 1]} : vector<3x4xf32> to vector<3x1xf32>
    %17 = vector.shape_cast %16 : vector<3x1xf32> to vector<1x3x1xf32>
    %18 = vector.extract_strided_slice %2 {offsets = [0, 2, 0], sizes = [1, 1, 256], strides = [1, 1, 1]} : vector<1x4x256xf32> to vector<1x1x256xf32>
    %19 = vector.broadcast %17 : vector<1x3x1xf32> to vector<1x3x256xf32>
    %20 = vector.broadcast %18 : vector<1x1x256xf32> to vector<1x3x256xf32>
    %21 = arith.mulf %19, %20 : vector<1x3x256xf32>
    %22 = arith.addf %15, %21 : vector<1x3x256xf32>
    %23 = vector.extract_strided_slice %0 {offsets = [0, 3], sizes = [3, 1], strides = [1, 1]} : vector<3x4xf32> to vector<3x1xf32>
    %24 = vector.shape_cast %23 : vector<3x1xf32> to vector<1x3x1xf32>
    %25 = vector.extract_strided_slice %2 {offsets = [0, 3, 0], sizes = [1, 1, 256], strides = [1, 1, 1]} : vector<1x4x256xf32> to vector<1x1x256xf32>
    %26 = vector.broadcast %24 : vector<1x3x1xf32> to vector<1x3x256xf32>
    %27 = vector.broadcast %25 : vector<1x1x256xf32> to vector<1x3x256xf32>
    %28 = arith.mulf %26, %27 : vector<1x3x256xf32>
    %29 = arith.addf %22, %28 : vector<1x3x256xf32>
    %30 = vector.shape_cast %1 : vector<3x1xf32> to vector<1x3x1xf32>
    %31 = vector.broadcast %30 : vector<1x3x1xf32> to vector<1x3x256xf32>
    %32 = arith.addf %29, %31 : vector<1x3x256xf32>
    %c0_6 = arith.constant 0 : index
    %c0_7 = arith.constant 0 : index
    %c0_8 = arith.constant 0 : index
    %33 = vector.load %arg5[%c0_6, %c0_7, %c0_8] : memref<1x3x256xf32, #tpu.memory_space<vmem>>, vector<1x3x256xf32>
    tpu.vector_store %arg5[%c0_6, %c0_7, %c0_8], %32 {strides = array<i32>} : memref<1x3x256xf32, #tpu.memory_space<vmem>>, vector<1x3x256xf32>,
    return
  }
  func.func @transform_0(%arg0: i32, %arg1: i32) -> (i32, i32, i32) {
    %c0_i32 = arith.constant 0 : i32
    %c0_i32_0 = arith.constant 0 : i32
    return %arg0, %c0_i32, %arg1 : i32, i32, i32
  }
  func.func @transform_1(%arg0: i32, %arg1: i32) -> (i32, i32) {
    %c0_i32 = arith.constant 0 : i32
    %c0_i32_0 = arith.constant 0 : i32
    %c0_i32_1 = arith.constant 0 : i32
    return %c0_i32, %c0_i32_0 : i32, i32
  }
  func.func @transform_2(%arg0: i32, %arg1: i32) -> (i32, i32) {
    %c0_i32 = arith.constant 0 : i32
    %c0_i32_0 = arith.constant 0 : i32
    %c0_i32_1 = arith.constant 0 : i32
    return %c0_i32, %c0_i32_0 : i32, i32
  }
  func.func @transform_3(%arg0: i32, %arg1: i32) -> (i32, i32, i32) {
    %c0_i32 = arith.constant 0 : i32
    %c0_i32_0 = arith.constant 0 : i32
    return %arg0, %c0_i32, %arg1 : i32, i32, i32
  }
}

</mosaic_0001>

<bundles_post_ra>
// kernel: tpu_custom_call.1
= control target key start
LH: loop header
LB: loop body
LE: loop exit
PB: predicated region body
PF: predicated region fallthrough
CT: control target
= control target key end

     0   :  { %8 = vsyncpa [#allocation3], 0  ;;  %s749_s0 = inlined_call_operand.hbm [shape: f32[2,4,256], index: 0, kind: input, shape index: {}]   ;;  %s750_s1 = inlined_call_operand.vmem [shape: f32[3,4], index: 1, kind: input, shape index: {}]   ;;  %s751_s2 = inlined_call_operand.vmem [shape: f32[3,1], index: 2, kind: input, shape index: {}]   ;;  %s752_s3 = inlined_call_operand.vmem [shape: f32[2,3,256], index: 3, kind: output, shape index: {}]  }
   0x1   :  { %10 = vsyncpa [#allocation3 + $0x1], 0  ;;  %s618_s12 = smov 0   ;;  %s620_s13 = smov 0  }
   0x2   :  { %s622_s14 = smov 0   ;;  %s624_s15 = smov 0  }
   0x3   :  { %s626_s16 = smov 0   ;;  %s628_s17 = smov 0  }
   0x4 LB: > { %s431_s18 = sadd.s32 4294967295, %s591_s17   ;;  %s28_s19 = sadd.s32 1, %s587_s16  ;;  %s591_s17 = sphi %s628_s17, %s16_s17   ;;  %s587_s16 = sphi %s626_s16, %s762_s16   ;;  %s583_s15 = sphi %s624_s15, %s761_s15   ;;  %s579_s14 = sphi %s622_s14, %s760_s14   ;;  %s575_s13 = sphi %s620_s13, %s759_s13   ;;  %s571_s12 = sphi %s618_s12, %s758_s12  }
   0x5   : > { %p30_p0 = scmp.ge.s32.totalorder %s28_s19, 2  ;;  %s37_s20 = sadd.s32 1, %s579_s14 }
   0x6   : > { %p44_p1 = scmp.ne.s32.totalorder %s579_s14, %s575_s13  ;;  %p45_p2 = scmp.eq.s32.totalorder %s591_s17, 0 }
   0x7   : > { %s764_s19 = smov (%p30_p0, %s28_s19), 0  ;;  %p50_p4 = scmp.ne.s32.totalorder %s575_s13, %s571_s12 }
   0x8   : > { %p654_p3 = por %p45_p2, %p44_p1  ;;  %s32_s22 = ssub.s32 %s587_s16, %s764_s19 }
   0x9   : > { %p51_p5 = scmp.eq.s32.totalorder %s431_s18, 0  ;;  %p35_p6 = scmp.eq.s32.totalorder %s32_s22, 0 }
   0xa   : > { %p452_p8 = scmp.lt.s32.totalorder %s591_s17, 2  ;;  %s150_s25 = sand.u32 1, %s579_s14  }
   0xb   : > { %p661_p7 = por %p51_p5, %p50_p4  ;;  %s444_s26 = sshll.u32 %s587_s16, 7 }
   0xc   : > { %s667_s24 = scalar_select %p35_p6, %s579_s14, %s37_s20  }
   0xd   : > { %s435_s27 = sshll.u32 %s150_s25, 3  ;;  %s674_s30 = scalar_lea.hbm %s749_s0, %s444_s26 }
   0xe   : > { %s154_s4 = scalar_lea.vmem [#allocation2], %s435_s27  ;;  %p678_p9 = pnand %p452_p8, %p654_p3 }
   0xf   : > { %s164_s5 = sshll.u32 %s154_s4, 4  ;;  %s151_s7 = scalar_lea.sflag [#allocation3], %s150_s25  ;;  %s682_s5 = int_to_ptr.vmem [resolvable:$true] %s164_s5 }
  0x10   : > { %s511_s8 = scalar_lea.hbm %s674_s30, 128  ;;  %p513_p13 = pneg %p678_p9 }
  0x11   : > { %p512_p12 = scmp.ne.s32.totalorder %s674_s30, %s511_s8  ;;  %s516_s11 = scalar_lea.hbm %s749_s0, 256 }
  0x12   : > { %p517_p2 = scmp.lt.u32.totalorder %s674_s30, %s749_s0  ;;  %p518_p3 = scmp.lt.u32.totalorder %s516_s11, %s511_s8 }
  0x13   : > { %p514_p0 = pnand %p513_p13, %p512_p12  ;;  %p520_p5 = scmp.lt.u32.totalorder %s511_s8, %s674_s30 }
  0x14   : > { %p519_p4 = por %p518_p3, %p517_p2 }
  0x15   : > { %p515_p1 = pneg %p514_p0 }
  0x16   : > { %p521_p6 = por %p520_p5, %p519_p4 }
  0x18   : > { %p522_p8 = pnand %p521_p6, %p515_p1 }
  0x1a   : > { %525 = shalt.err (!%p522_p8)
}
  0x1b   : > { %s526_s20 = scalar_lea.vmem %s682_s5, 128  ;;  %s593_s21 = smov [#allocation2]  }
  0x1c   : > { %p527_p12 = scmp.ne.s32.totalorder %s682_s5, %s526_s20  ;;  %s531_s22 = sshll.u32 %s593_s21, 4  ;;  %s532_s22 = int_to_ptr.vmem [resolvable:$false] %s531_s22 }
  0x1d   : > { %s533_s25 = scalar_lea.vmem %s532_s22, 256  ;;  %p534_p11 = scmp.lt.s32.totalorder %s682_s5, %s532_s22 }
  0x1e   : > { %p529_p0 = pnand %p527_p12, %p513_p13  ;;  %p535_p2 = scmp.lt.s32.totalorder %s533_s25, %s526_s20 }
  0x20   : > { %p530_p10 = pneg %p529_p0  ;;  %p536_p3 = por %p535_p2, %p534_p11 }
  0x22   : > { %p537_p4 = pnand %p536_p3, %p530_p10 }
  0x24   : > { %540 = shalt.err (!%p537_p4)
}
  0x25   : > { %451 = dma.hbm_to_vmem [thread:$0]  (!%p678_p9), %s674_s30, 128, %s682_s5, %s151_s7  }
  0x26   : > { %p756_p1 = scmp.lt.s32.totalorder %s591_s17, 3  ;;  %p757_p5 = scmp.ge.s32.totalorder %s591_s17, 1 }
  0x28   : > { %p170_p13 = pnand %p757_p5, %p756_p1 }
  0x29   : > { %s175_s26 = sand.u32 (!%p170_p13), 1, %s575_s13  }
  0x2a   : > { %173 = sbr.rel (%p170_p13) target bundleno = 198 (0xc6), region = 32  ;;  %s439_s27 = sshll.u32 (!%p170_p13), %s175_s26, 3 }
  0x2b   : > { %s176_s28 = scalar_lea.sflag (!%p170_p13), [#allocation3], %s175_s26  ;;  %s179_s29 = scalar_lea.vmem (!%p170_p13), [#allocation2], %s439_s27 }
  0x31   : > { %566 = dma.done.wait (%p661_p7), %s176_s28, 128  }
  0x32   : > { %568 = vsyncadd (%p661_p7), %s176_s28, 4294967168  ;;  %v594_v0 = vmov 0   ;;  %v595_v1 = vmov 2   ;;  %v217_v2 = vld [vmem:[%s750_s1] sm:$0x7]  ;;  %v596_v3 = vmov 1   ;;  %v226_v6 = vlaneseq }
  0x33   : > { %505 = vset.pattern.permute.xlu0 %v594_v0  ;;  %507 = vset.pattern.permute.xlu1 %v595_v1  ;;  %v597_v4 = vmov 3   ;;  %v218_v5 = vld [vmem:[%s751_s2] sm:$0x7]  ;;  %p208_p7 = scmp.lt.s32.totalorder %s583_s15, 1 }
  0x34   : > { %222 = vperm.xlu0 %505, %v217_v2   ;;  %273 = vperm.xlu1 %507, %v217_v2   ;;  %v227_v7 = vshrl.u32 %v226_v6, 7  ;;  %v219_v12 = vld [vmem:[%s179_s29] sm:$0xff] }
  0x35   : > { %s766_s15 = smov (!%p208_p7, %s583_s15), 1 }
  0x36   : > { %v228_v8 = vsub.s32 0, %v227_v7  ;;  %v232_v9 = vsub.s32 4, %v227_v7  ;;  %v252_v10 = vsub.s32 1, %v227_v7  ;;  %v256_v11 = vsub.s32 5, %v227_v7  ;;  %s445_s23 = sshll.u32 %s766_s15, 3 }
  0x37   : > { %v278_v13 = vsub.s32 2, %v227_v7  ;;  %v282_v14 = vsub.s32 6, %v227_v7  ;;  %v304_v15 = vsub.s32 3, %v227_v7  ;;  %v308_v16 = vsub.s32 7, %v227_v7  ;;  %s215_s9 = scalar_lea.vmem %s752_s3, %s445_s23 }
  0x38   : > { %506 = vset.pattern.permute.xlu0 %v596_v3  ;;  %508 = vset.pattern.permute.xlu1 %v597_v4  ;;  %v229_v17 = vrot.slane %v219_v12, %v228_v8  ;;  %v233_v18 = vrot.slane %v219_v12, %v232_v9  ;;  %v253_v19 = vrot.slane %v219_v12, %v252_v10 }
  0x39   : > { %247 = vperm.xlu0 %506, %v217_v2   ;;  %299 = vperm.xlu1 %508, %v217_v2   ;;  %v257_v20 = vrot.slane %v219_v12, %v256_v11  ;;  %v279_v21 = vrot.slane %v219_v12, %v278_v13  ;;  %v283_v22 = vrot.slane %v219_v12, %v282_v14 }
  0x3a   : > { %v305_v25 = vrot.slane %v219_v12, %v304_v15  ;;  %v309_v26 = vrot.slane %v219_v12, %v308_v16  ;;  %v239_v27 = vrot.slane %v229_v17, %v228_v8  ;;  %v243_v28 = vrot.slane %v233_v18, %v228_v8 }
  0x3b   : > { %v263_v29 = vrot.slane %v253_v19, %v252_v10  ;;  %v267_v30 = vrot.slane %v257_v20, %v252_v10  ;;  %v289_v31 = vrot.slane %v279_v21, %v278_v13  ;;  %v293_v32 = vrot.slane %v283_v22, %v278_v13 }
  0x3c   : > { %v315_v33 = vrot.slane %v305_v25, %v304_v15  ;;  %v319_v34 = vrot.slane %v309_v26, %v304_v15 }
  0x3d   : > { %509 = vset.pattern.permute.xlu1 %v594_v0  ;;  %510 = vset.pattern.permute.xlu0 %v594_v0 }
  0x3e   : > { %326 = vperm.xlu1 %509, %v218_v5  }
  0xb3   : > { %v223_v23 = vpop.permute.xlu0 %222  ;;  %v274_v24 = vpop.permute.xlu1 %273 }
  0xb4   : > { %v244_v37 = vmul.f32 %v239_v27, %v223_v23  ;;  %v245_v38 = vmul.f32 %v243_v28, %v223_v23  ;;  %v294_v41 = vmul.f32 %v289_v31, %v274_v24  ;;  %v295_v42 = vmul.f32 %v293_v32, %v274_v24 }
  0xb8   : > { %v248_v35 = vpop.permute.xlu0 %247  ;;  %v300_v36 = vpop.permute.xlu1 %299 }
  0xb9   : > { %v268_v39 = vmul.f32 %v263_v29, %v248_v35  ;;  %v269_v40 = vmul.f32 %v267_v30, %v248_v35  ;;  %v320_v45 = vmul.f32 %v315_v33, %v300_v36  ;;  %v321_v46 = vmul.f32 %v319_v34, %v300_v36 }
  0xbb   : > { %v270_v43 = vadd.f32 %v268_v39, %v244_v37  ;;  %v271_v44 = vadd.f32 %v269_v40, %v245_v38 }
  0xbd   : > { %v296_v47 = vadd.f32 %v294_v41, %v270_v43  ;;  %v297_v48 = vadd.f32 %v295_v42, %v271_v44  ;;  %v327_v49 = vpop.permute.xlu1 %326 }
  0xbf   : > { %v322_v50 = vadd.f32 %v320_v45, %v296_v47  ;;  %v323_v51 = vadd.f32 %v321_v46, %v297_v48 }
  0xc1   : > { %v329_v52 = vadd.f32 %v327_v49, %v322_v50  ;;  %v330_v53 = vadd.f32 %v327_v49, %v323_v51 }
  0xc3   : > { %v333_v54 = vcombine.low %v329_v52, %v330_v53 }
  0xc5   : > { %335 = vst [vmem:[%s215_s9] sm:$0x77] %v333_v54 }
  0xc6 PF: > { %s16_s17 = sadd.s32 1, %s591_s17   ;;  %s758_s12 = smov %s575_s13 }
  0xc7   : > { %p13_p9 = scmp.ge.s32.totalorder %s16_s17, 4   ;;  %s759_s13 = smov %s579_s14 }
  0xc8   : > { %s760_s14 = smov %s667_s24  ;;  %s761_s15 = smov %s587_s16 }
  0xc9   : > { %s762_s16 = smov %s764_s19  ;;  %15 = sbr.rel (!%p13_p9) target bundleno = 4 (0x4), region = 72 }
  0xd0   :  { %366 = vsyncpa [#allocation3], 1 }
  0xd1   :  { %368 = vsyncpa [#allocation3 + $0x1], 1 }

</bundles_post_ra>
